<compile_context>
chip_gen: v7x
topology: tpu7x:2x2x1
jax: 0.10.0
libtpu: 0.0.40
codegen_flags: <defaults>
</compile_context>

<pallas_src>
import jax
import jax.numpy as jnp
from jax import lax
from jax.experimental import pallas as pl
from jax.experimental.pallas import tpu as pltpu

_SENTINEL = 1e5  # padded-point coordinate: finite, but far from any real point


def _arcosh(x, eps=1e-5):
    # matches the PyTorch arcosh(): clamp, then log(x + sqrt(1+x)*sqrt(x-1))
    x = jnp.maximum(x, 1.0 + eps)
    return jnp.log(x + jnp.sqrt(1.0 + x) * jnp.sqrt(x - 1.0))


def _round_up(n, m):
    return ((n + m - 1) // m) * m


def _pad_and_tile(n, tile, cap):
    """Return (padded size, tile size); both multiples of 128, tile | padded."""
    if tile is not None:
        assert tile % 128 == 0, "tile sizes must be multiples of 128"
        return _round_up(n, tile), tile
    npad = max(128, _round_up(n, 128))
    if npad <= cap:
        return npad, npad
    return _round_up(n, cap), cap


def _generation_caps():
    """(TN cap, TM cap, vmem_limit_bytes) sized to the chip's physical VMEM."""
    try:
        vmem = int(pltpu.get_tpu_info().vmem_capacity_bytes)
    except Exception:
        vmem = 64 * 1024 * 1024  # conservative (v7x-sized) fallback
    if vmem >= 96 * 1024 * 1024:          # v5e / v6e: 128 MiB physical VMEM
        return 512, 4096, 64 * 1024 * 1024
    return 512, 2048, 32 * 1024 * 1024    # v7x: 64 MiB physical VMEM


def chamfer_distance_hyper_v2(xyz1, xyz2, *, tn=None, tm=None):
    """xyz1: (B, N, D) f32, xyz2: (B, M, D) f32 -> scalar f32.

    Equivalent to ChamferDistanceHyperV2.forward (ignore_zeros=False):
        mean(arcosh(1 + dist1)) + mean(arcosh(1 + dist2))
    """
    B, N, D = xyz1.shape
    B2, M, D2 = xyz2.shape
    assert B2 == B and D2 == D and D <= 6  # need D+2 <= 8 homogeneous rows
    # TODO(synk): ignore_zeros (batch==1, drop all-zero points) needs
    # data-dependent shapes; not implemented in the static kernel.

    Dp = 8
    tn_cap, tm_cap, vmem_limit = _generation_caps()
    N_pad, TN = _pad_and_tile(N, tn, tn_cap)
    M_pad, TM = _pad_and_tile(M, tm, tm_cap)
    n_i = N_pad // TN
    n_j = M_pad // TM

    x1 = xyz1.astype(jnp.float32)
    x2 = xyz2.astype(jnp.float32)

    # Sentinel-pad the fictitious points so they can never win a min; no
    # in-kernel masking needed.
    x1p = jnp.full((B, N_pad, D), _SENTINEL, jnp.float32).at[:, :N, :].set(x1)
    x2p = jnp.full((B, M_pad, D), _SENTINEL, jnp.float32).at[:, :M, :].set(x2)
    sq1 = jnp.sum(x1p * x1p, axis=2)                       # (B, N_pad)
    sq2 = jnp.sum(x2p * x2p, axis=2)                       # (B, M_pad)

    # Homogeneous coordinates on the SUBLANE axis, points on the lane axis:
    #   x1h rows: [-2*x_0..-2*x_{D-1}, ||x||^2, 1, 0...]   -> (B, 8, N_pad)
    #   x2h rows: [ y_0..   y_{D-1},   1, ||y||^2, 0...]   -> (B, 8, M_pad)
    # so <x1h[:, n], x2h[:, m]> = ||x||^2 + ||y||^2 - 2<x, y>.
    x1h = jnp.zeros((B, Dp, N_pad), jnp.float32)
    x1h = x1h.at[:, :D, :].set(-2.0 * jnp.swapaxes(x1p, 1, 2))
    x1h = x1h.at[:, D, :].set(sq1)
    x1h = x1h.at[:, D + 1, :].set(1.0)

    x2h = jnp.zeros((B, Dp, M_pad), jnp.float32)
    x2h = x2h.at[:, :D, :].set(jnp.swapaxes(x2p, 1, 2))
    x2h = x2h.at[:, D, :].set(1.0)
    x2h = x2h.at[:, D + 1, :].set(sq2)

    def kernel(x1_ref, x2_ref, d1_ref, d2_ref):
        j = pl.program_id(2)

        x1b = x1_ref[0]        # (Dp, TN)
        x2b = x2_ref[0]        # (Dp, TM)

        # d[n, m] = ||x_n||^2 + ||y_m||^2 - 2<x_n, y_m>, straight off the MXU.
        d = lax.dot_general(
            x1b, x2b, (((0,), (0,)), ((), ())),
            preferred_element_type=jnp.float32,
            precision=lax.Precision.HIGHEST)               # (TN, TM)

        rowmin = jnp.min(d, axis=1, keepdims=True)         # (TN, 1)
        colmin = jnp.min(d, axis=0, keepdims=True)         # (1, TM)

        # dist2 partials: one independent block per (b, i, j); reduced over i
        # in the wrapper (keeps the i axis megacore-parallel).
        d2_ref[0, 0] = colmin

        # dist1: running min across j tiles, held in the resident output block.
        @pl.when(j == 0)
        def _():
            d1_ref[0] = rowmin

        @pl.when(j != 0)
        def _():
            d1_ref[0] = jnp.minimum(d1_ref[0], rowmin)

    cost = pl.CostEstimate(
        flops=2 * B * N_pad * M_pad * (Dp + 1),
        transcendentals=0,
        bytes_accessed=4 * (B * n_j * Dp * N_pad + B * n_i * Dp * M_pad
                            + B * N_pad + B * n_i * M_pad),
    )

    d1, d2 = pl.pallas_call(
        kernel,
        out_shape=(
            jax.ShapeDtypeStruct((B, N_pad, 1), jnp.float32),
            jax.ShapeDtypeStruct((B, n_i, 1, M_pad), jnp.float32),
        ),
        grid_spec=pltpu.PrefetchScalarGridSpec(
            num_scalar_prefetch=0,
            grid=(B, n_i, n_j),
            in_specs=[
                pl.BlockSpec((1, Dp, TN), lambda b, i, j: (b, 0, i)),
                pl.BlockSpec((1, Dp, TM), lambda b, i, j: (b, 0, j)),
            ],
            out_specs=[
                pl.BlockSpec((1, TN, 1), lambda b, i, j: (b, i, 0)),
                pl.BlockSpec((1, 1, 1, TM), lambda b, i, j: (b, i, 0, j)),
            ],
        ),
        compiler_params=pltpu.CompilerParams(
            dimension_semantics=("parallel", "parallel", "arbitrary"),
            vmem_limit_bytes=vmem_limit,
        ),
        cost_estimate=cost,
    )(x1h, x2h)

    # Finalize in the wrapper: O(N + M) work.
    dist1 = d1[:, :N, 0]                                   # (B, N)
    dist2 = jnp.min(d2, axis=1)[:, 0, :M]                  # (B, M)
    return jnp.mean(_arcosh(1.0 + dist1)) + jnp.mean(_arcosh(1.0 + dist2))


def _reference(xyz1, xyz2):
    d = jnp.sum((xyz1[:, :, None, :] - xyz2[:, None, :, :]) ** 2, axis=-1)
    d1 = jnp.min(d, axis=2)
    d2 = jnp.min(d, axis=1)
    return jnp.mean(_arcosh(1.0 + d1)) + jnp.mean(_arcosh(1.0 + d2))


if __name__ == "__main__":
    key = jax.random.PRNGKey(0)
    k1, k2, k3, k4, k5 = jax.random.split(key, 5)

    # Case 1: non-aligned sizes -> sentinel padding, 2x2x2 tile grid.
    B, N, M = 2, 200, 160
    xyz1 = jax.random.normal(k1, (B, N, 3), dtype=jnp.float32)
    xyz2 = jax.random.normal(k2, (B, M, 3), dtype=jnp.float32)
    out = jax.block_until_ready(
        chamfer_distance_hyper_v2(xyz1, xyz2, tn=128, tm=128))
    ref = _reference(xyz1, xyz2)
    assert jnp.allclose(out, ref, rtol=1e-3, atol=1e-4), (out, ref)

    # Case 2: aligned sizes, default per-generation tiling (single tile).
    B, N, M = 1, 256, 384
    xyz1 = jax.random.normal(k3, (B, N, 3), dtype=jnp.float32)
    xyz2 = jax.random.normal(k4, (B, M, 3), dtype=jnp.float32)
    out = jax.block_until_ready(chamfer_distance_hyper_v2(xyz1, xyz2))
    ref = _reference(xyz1, xyz2)
    assert jnp.allclose(out, ref, rtol=1e-3, atol=1e-4), (out, ref)

    # Case 3: near-duplicate clouds (tiny nearest-neighbour distances) —
    # exercises the norm-expansion cancellation path; precision=HIGHEST plus
    # the arcosh clamp at 1+1e-5 keeps it aligned with the direct reference.
    B, N, M = 1, 256, 256
    xyz1 = jax.random.normal(k5, (B, N, 3), dtype=jnp.float32)
    xyz2 = xyz1 + 1e-3 * jax.random.normal(k2, (B, M, 3), dtype=jnp.float32)
    out = jax.block_until_ready(chamfer_distance_hyper_v2(xyz1, xyz2))
    ref = _reference(xyz1, xyz2)
    assert jnp.allclose(out, ref, rtol=1e-2, atol=1e-3), (out, ref)

    print("KERNEL_OK")
</pallas_src>

<mosaic_0001>
module attributes {stable_mosaic.version = 11 : i64} {
  func.func @kernel(%arg0: i32, %arg1: i32, %arg2: i32, %arg3: memref<1x8x128xf32, #tpu.memory_space<vmem>>, %arg4: memref<1x8x128xf32, #tpu.memory_space<vmem>>, %arg5: memref<1x128x1xf32, #tpu.memory_space<vmem>>, %arg6: memref<1x1x1x128xf32, #tpu.memory_space<vmem>>) attributes {dimension_semantics = [#tpu.dimension_semantics<parallel>, #tpu.dimension_semantics<parallel>, #tpu.dimension_semantics<arbitrary>], iteration_bounds = array<i64: 2, 2, 2>, scalar_prefetch = 0 : i64, scratch_operands = 0 : i64, tpu.core_type = #tpu.core_type<tc>, window_params = [{transform_indices = @transform_0, window_bounds = array<i64: 1, 8, 128>}, {transform_indices = @transform_1, window_bounds = array<i64: 1, 8, 128>}, {transform_indices = @transform_2, window_bounds = array<i64: 1, 128, 1>}, {transform_indices = @transform_3, window_bounds = array<i64: 1, 1, 1, 128>}]} {
    %c0 = arith.constant 0 : index
    %c0_0 = arith.constant 0 : index
    %c0_1 = arith.constant 0 : index
    %0 = vector.load %arg3[%c0, %c0_0, %c0_1] : memref<1x8x128xf32, #tpu.memory_space<vmem>>, vector<1x8x128xf32>
    %1 = vector.shape_cast %0 : vector<1x8x128xf32> to vector<8x128xf32>
    %c0_2 = arith.constant 0 : index
    %c0_3 = arith.constant 0 : index
    %c0_4 = arith.constant 0 : index
    %2 = vector.load %arg4[%c0_2, %c0_3, %c0_4] : memref<1x8x128xf32, #tpu.memory_space<vmem>>, vector<1x8x128xf32>
    %3 = vector.shape_cast %2 : vector<1x8x128xf32> to vector<8x128xf32>
    %cst = arith.constant dense<0.000000e+00> : vector<128x128xf32>
    %4 = tpu.matmul %1, %3, %cst {dimension_numbers = #tpu.dot_dimension_numbers<[0], [0], [1], [1], [0, 1, 1, 1], [], []>, precision = #tpu.contract_precision<fp32>} : vector<8x128xf32>, vector<8x128xf32>, vector<128x128xf32> -> vector<128x128xf32>
    %cst_5 = arith.constant dense<0x7F800000> : vector<128xf32>
    %5 = vector.multi_reduction <minimumf>, %4, %cst_5 [1] : vector<128x128xf32> to vector<128xf32>
    %6 = vector.shape_cast %5 : vector<128xf32> to vector<128x1xf32>
    %cst_6 = arith.constant dense<0x7F800000> : vector<128xf32>
    %7 = vector.multi_reduction <minimumf>, %4, %cst_6 [0] : vector<128x128xf32> to vector<128xf32>
    %8 = vector.shape_cast %7 : vector<128xf32> to vector<1x128xf32>
    %c0_7 = arith.constant 0 : index
    %c0_8 = arith.constant 0 : index
    %c0_9 = arith.constant 0 : index
    %c0_10 = arith.constant 0 : index
    %9 = vector.load %arg6[%c0_7, %c0_8, %c0_9, %c0_10] : memref<1x1x1x128xf32, #tpu.memory_space<vmem>>, vector<1x1x1x128xf32>
    %10 = vector.shape_cast %9 : vector<1x1x1x128xf32> to vector<1x128xf32>
    %11 = vector.shape_cast %8 : vector<1x128xf32> to vector<1x1x1x128xf32>
    tpu.vector_store %arg6[%c0_7, %c0_8, %c0_9, %c0_10], %11 {strides = array<i32>} : memref<1x1x1x128xf32, #tpu.memory_space<vmem>>, vector<1x1x1x128xf32>,
    %c0_i32 = arith.constant 0 : i32
    %12 = arith.cmpi eq, %arg2, %c0_i32 : i32
    %13 = arith.extui %12 : i1 to i32
    %c0_i32_11 = arith.constant 0 : i32
    %14 = arith.cmpi ne, %13, %c0_i32_11 : i32
    scf.if %14 {
      %c0_14 = arith.constant 0 : index
      %c0_15 = arith.constant 0 : index
      %c0_16 = arith.constant 0 : index
      %18 = vector.load %arg5[%c0_14, %c0_15, %c0_16] : memref<1x128x1xf32, #tpu.memory_space<vmem>>, vector<1x128x1xf32>
      %19 = vector.shape_cast %18 : vector<1x128x1xf32> to vector<128x1xf32>
      %20 = vector.shape_cast %6 : vector<128x1xf32> to vector<1x128x1xf32>
      tpu.vector_store %arg5[%c0_14, %c0_15, %c0_16], %20 {strides = array<i32>} : memref<1x128x1xf32, #tpu.memory_space<vmem>>, vector<1x128x1xf32>,
    } else {
    }
    %c0_i32_12 = arith.constant 0 : i32
    %15 = arith.cmpi ne, %arg2, %c0_i32_12 : i32
    %16 = arith.extui %15 : i1 to i32
    %c0_i32_13 = arith.constant 0 : i32
    %17 = arith.cmpi ne, %16, %c0_i32_13 : i32
    scf.if %17 {
      %c0_14 = arith.constant 0 : index
      %c0_15 = arith.constant 0 : index
      %c0_16 = arith.constant 0 : index
      %18 = vector.load %arg5[%c0_14, %c0_15, %c0_16] : memref<1x128x1xf32, #tpu.memory_space<vmem>>, vector<1x128x1xf32>
      %19 = vector.shape_cast %18 : vector<1x128x1xf32> to vector<128x1xf32>
      %20 = arith.minimumf %19, %6 : vector<128x1xf32>
      %c0_17 = arith.constant 0 : index
      %c0_18 = arith.constant 0 : index
      %c0_19 = arith.constant 0 : index
      %21 = vector.load %arg5[%c0_17, %c0_18, %c0_19] : memref<1x128x1xf32, #tpu.memory_space<vmem>>, vector<1x128x1xf32>
      %22 = vector.shape_cast %21 : vector<1x128x1xf32> to vector<128x1xf32>
      %23 = vector.shape_cast %20 : vector<128x1xf32> to vector<1x128x1xf32>
      tpu.vector_store %arg5[%c0_17, %c0_18, %c0_19], %23 {strides = array<i32>} : memref<1x128x1xf32, #tpu.memory_space<vmem>>, vector<1x128x1xf32>,
    } else {
    }
    return
  }
  func.func @transform_0(%arg0: i32, %arg1: i32, %arg2: i32) -> (i32, i32, i32) {
    %c0_i32 = arith.constant 0 : i32
    %c0_i32_0 = arith.constant 0 : i32
    return %arg0, %c0_i32, %arg1 : i32, i32, i32
  }
  func.func @transform_1(%arg0: i32, %arg1: i32, %arg2: i32) -> (i32, i32, i32) {
    %c0_i32 = arith.constant 0 : i32
    %c0_i32_0 = arith.constant 0 : i32
    return %arg0, %c0_i32, %arg2 : i32, i32, i32
  }
  func.func @transform_2(%arg0: i32, %arg1: i32, %arg2: i32) -> (i32, i32, i32) {
    %c0_i32 = arith.constant 0 : i32
    %c0_i32_0 = arith.constant 0 : i32
    return %arg0, %arg1, %c0_i32 : i32, i32, i32
  }
  func.func @transform_3(%arg0: i32, %arg1: i32, %arg2: i32) -> (i32, i32, i32, i32) {
    %c0_i32 = arith.constant 0 : i32
    %c0_i32_0 = arith.constant 0 : i32
    return %arg0, %arg1, %c0_i32, %arg2 : i32, i32, i32, i32
  }
}

</mosaic_0001>

<bundles_post_ra>
// kernel: tpu_custom_call.1
= control target key start
LH: loop header
LB: loop body
LE: loop exit
PB: predicated region body
PF: predicated region fallthrough
CT: control target
= control target key end

     0   :  { %s3223_s0 = inlined_call_operand.hbm [shape: f32[2,8,256], index: 0, kind: input, shape index: {}]   ;;  %s3224_s1 = inlined_call_operand.hbm [shape: f32[2,8,256], index: 1, kind: input, shape index: {}]   ;;  %s3225_s2 = inlined_call_operand.vmem [shape: f32[2,256,1], index: 2, kind: output, shape index: {0}]   ;;  %s3226_s3 = inlined_call_operand.hbm [shape: f32[2,2,1,256], index: 3, kind: output, shape index: {1}]  }
   0x1   :  { %3250 = sst [smem:[#allocation25_spill]] %s3223_s0 }
   0x2   :  { %3251 = sst [smem:[#allocation26_spill]] %s3225_s2 }
   0x3   :  { %3252 = sst [smem:[#allocation27_spill]] %s3226_s3 }
   0x4   :  { %9 = vsyncpa [#allocation3], 0 }
   0x5   :  { %11 = vsyncpa [#allocation3 + $0x1], 0 }
   0x6   :  { %12 = vsyncpa [#allocation6], 0 }
   0x7   :  { %14 = vsyncpa [#allocation6 + $0x1], 0 }
   0x8   :  { %15 = vsyncpa [#allocation4], 0 }
   0x9   :  { %17 = vsyncpa [#allocation4 + $0x1], 0  ;;  %s2520_s12 = smov 0   ;;  %s2522_s13 = smov 0  }
   0xa   :  { %s2524_s14 = smov 0   ;;  %s2526_s15 = smov 0  }
   0xb   :  { %s2528_s16 = smov 0   ;;  %s2530_s17 = smov 0  }
   0xc   :  { %s2532_s18 = smov 0   ;;  %s2534_s19 = smov 0  }
   0xd   :  { %s2536_s20 = smov 0   ;;  %s2538_s21 = smov 0  }
   0xe   :  { %s2540_s22 = smov 0   ;;  %s2542_s23 = smov 0  }
   0xf   :  { %s2544_s24 = smov 0   ;;  %s2546_s25 = smov 0  }
  0x10   :  { %s2548_s26 = smov 0   ;;  %s2550_s27 = smov 0  }
  0x11 LB: > { %3253 = sst [smem:[#allocation11_spill]] %s2435_s12  ;;  %s1760_s28 = sadd.s32 4294967295, %s2495_s27   ;;  %s2495_s27 = sphi %s2550_s27, %s23_s27   ;;  %s2491_s26 = sphi %s2548_s26, %s3328_s26   ;;  %s2487_s25 = sphi %s2546_s25, %s3314_s25   ;;  %s2483_s24 = sphi %s2544_s24, %s3327_s24   ;;  %s2479_s23 = sphi %s2542_s23, %s3326_s23   ;;  %s2475_s22 = sphi %s2540_s22, %s3312_s22   ;;  %s2471_s21 = sphi %s2538_s21, %s3325_s21   ;;  %s2467_s20 = sphi %s2536_s20, %s3324_s20   ;;  %s2463_s19 = sphi %s2534_s19, %s3323_s19   ;;  %s2459_s18 = sphi %s2532_s18, %s3322_s18   ;;  %s2455_s17 = sphi %s2530_s17, %s3321_s17   ;;  %s2451_s16 = sphi %s2528_s16, %s3320_s16   ;;  %s2447_s15 = sphi %s2526_s15, %s3319_s15   ;;  %s2443_s14 = sphi %s2524_s14, %s3318_s14   ;;  %s2439_s13 = sphi %s2522_s13, %s3317_s13   ;;  %s2435_s12 = sphi %s2520_s12, %s3316_s12  }
  0x12   : > { %3254 = sst [smem:[#allocation12_spill]] %s2439_s13  ;;  %p58_p0 = scmp.ne.s32.totalorder %s2467_s20, %s2463_s19 }
  0x13   : > { %3255 = sst [smem:[#allocation13_spill]] %s2451_s16  ;;  %p3230_p1 = scmp.eq.s32.totalorder %s2495_s27, 0 }
  0x14   : > { %3256 = sst [smem:[#allocation14_spill]] %s2471_s21  ;;  %p64_p2 = scmp.ne.s32.totalorder %s2463_s19, %s2459_s18 }
  0x15   : > { %3257 = sst [smem:[#allocation15_spill]] %s2475_s22  ;;  %p2605_p3 = scmp.eq.s32.totalorder %s1760_s28, 0 }
  0x16   : > { %3258 = sst [smem:[#allocation16_spill]] %s2479_s23  ;;  %p60_p4 = por %p3230_p1, %p58_p0 }
  0x17   : > { %3259 = sst [smem:[#allocation17_spill]] %s2487_s25  ;;  %p2614_p5 = por %p2605_p3, %p64_p2 }
  0x18   : > { %p3229_p6 = scmp.lt.s32.totalorder %s2495_s27, 8  ;;  %s174_s7 = sand.u32 1, %s2467_s20  }
  0x19   : > { %s3261_s6 = scalar_select %p2614_p5, 1, 0 }
  0x1a   : > { %s1764_s8 = sshll.u32 %s174_s7, 3  ;;  %s3228_s9 = sshll.u32 %s2491_s26, 1 }
  0x1b   : > { %3262 = sst [smem:[#allocation18_spill]] %s3261_s6  ;;  %s183_s10 = sadd.s32 %s2487_s25, %s3228_s9 }
  0x1c   : > { %s178_s11 = scalar_lea.vmem [#allocation2], %s1764_s8  ;;  %s1766_s30 = sshll.u32 %s183_s10, 7 }
  0x1d   : > { %s187_s18 = sshll.u32 %s178_s11, 4  ;;  %s3263_s0 = sld [smem:[#allocation25_spill]]  ;;  %s2624_s18 = int_to_ptr.vmem [resolvable:$true] %s187_s18 }
  0x1e   : > { %p2633_p7 = pnand %p3229_p6, %p60_p4  ;;  %p2639_p10 = scmp.eq.s32.totalorder %s1760_s28, 7 }
  0x1f   : > { %s175_s29 = scalar_lea.sflag [#allocation3], %s174_s7 }
  0x20   : > { %s3265_s8 = scalar_select %p2639_p10, 1, 0 }
  0x21   : > { %p2271_p12 = pneg %p2633_p7 }
  0x23   : > { %s2629_s3 = scalar_lea.hbm %s3263_s0, %s1766_s30  ;;  %s2274_s11 = scalar_lea.hbm %s3263_s0, 512 }
  0x24   : > { %s2269_s30 = scalar_lea.hbm %s2629_s3, 128  ;;  %p2275_p2 = scmp.lt.u32.totalorder %s2629_s3, %s3263_s0 }
  0x25   : > { %p2270_p11 = scmp.ne.s32.totalorder %s2629_s3, %s2269_s30  ;;  %p2276_p4 = scmp.lt.u32.totalorder %s2274_s11, %s2269_s30 }
  0x26   : > { %p2278_p1 = scmp.lt.u32.totalorder %s2269_s30, %s2629_s3 }
  0x27   : > { %p2272_p13 = pnand %p2271_p12, %p2270_p11  ;;  %p2277_p6 = por %p2276_p4, %p2275_p2 }
  0x29   : > { %p2273_p0 = pneg %p2272_p13  ;;  %p2279_p8 = por %p2278_p1, %p2277_p6 }
  0x2b   : > { %p2280_p9 = pnand %p2279_p8, %p2273_p0 }
  0x2d   : > { %2283 = shalt.err (!%p2280_p9)
}
  0x2e   : > { %s2284_s28 = scalar_lea.vmem %s2624_s18, 128  ;;  %s2497_s7 = smov [#allocation2]  }
  0x2f   : > { %p2285_p11 = scmp.ne.s32.totalorder %s2624_s18, %s2284_s28  ;;  %s2289_s5 = sshll.u32 %s2497_s7, 4  ;;  %s2290_s5 = int_to_ptr.vmem [resolvable:$false] %s2289_s5 }
  0x30   : > { %s2291_s2 = scalar_lea.vmem %s2290_s5, 256  ;;  %p2292_p10 = scmp.lt.s32.totalorder %s2624_s18, %s2290_s5 }
  0x31   : > { %p2287_p13 = pnand %p2285_p11, %p2271_p12  ;;  %p2293_p2 = scmp.lt.s32.totalorder %s2291_s2, %s2284_s28 }
  0x33   : > { %p2288_p5 = pneg %p2287_p13  ;;  %p2294_p4 = por %p2293_p2, %p2292_p10 }
  0x35   : > { %p2295_p1 = pnand %p2294_p4, %p2288_p5 }
  0x37   : > { %2298 = shalt.err (!%p2295_p1)
}
  0x38   : > { %2130 = dma.hbm_to_vmem [thread:$0]  (!%p2633_p7), %s2629_s3, 128, %s2624_s18, %s175_s29  }
  0x39   : > { %p3266_p5 = scmp.lt.s32.totalorder %s2495_s27, 9  ;;  %p3267_p6 = scmp.ge.s32.totalorder %s2495_s27, 1 }
  0x3a   : > { %s35_s9 = sadd.s32 1, %s2483_s24  ;;  %s1761_s30 = sadd.s32 4294967294, %s2495_s27  }
  0x3b   : > { %p2672_p8 = pnand %p3267_p6, %p3266_p5  ;;  %p36_p9 = scmp.ge.s32.totalorder %s35_s9, 2 }
  0x3c   : > { %p86_p10 = scmp.ne.s32.totalorder %s2455_s17, %s2451_s16  ;;  %p92_p12 = scmp.ne.s32.totalorder %s2451_s16, %s2447_s15 }
  0x3d   : > { %s3330_s9 = smov (%p36_p9, %s35_s9), 0  ;;  %s3270_s3 = sadd.s32 1, %s2487_s25 }
  0x3e   : > { %3269 = sst [smem:[#allocation19_spill]] %s3330_s9  ;;  %s3332_s3 = smov (!%p36_p9, %s3270_s3), %s2487_s25 }
  0x3f   : > { %s75_s18 = ssub.s32 %s2483_s24, %s3330_s9  ;;  %s79_s29 = sadd.s32 1, %s2455_s17 }
  0x40   : > { %p40_p7 = scmp.ge.s32.totalorder %s3332_s3, 2  ;;  %p2692_p0 = por %p92_p12, %p2605_p3 }
  0x41   : > { %p3273_p11 = scmp.eq.s32.totalorder %s2495_s27, 0  ;;  %p147_p2 = scmp.ne.s32.totalorder %s2443_s14, %s2439_s13 }
  0x42   : > { %s3271_s10 = scalar_select %p2692_p0, 1, 0 }
  0x43   : > { %p2698_p13 = por %p86_p10, %p3273_p11  ;;  %s3334_s3 = smov (%p40_p7, %s3332_s3), 0 }
  0x44   : > { %3272 = sst [smem:[#allocation20_spill]] %s3271_s10  ;;  %s3276_s15 = sadd.s32 1, %s2491_s26 }
  0x45   : > { %3275 = sst [smem:[#allocation21_spill]] %s3334_s3  ;;  %s3336_s15 = smov (!%p40_p7, %s3276_s15), %s2491_s26 }
  0x46   : > { %s47_s28 = ssub.s32 %s2487_s25, %s3334_s3  ;;  %p3277_p4 = scmp.ne.s32.totalorder %s3265_s8, 0 }
  0x47   : > { %p44_p3 = scmp.ge.s32.totalorder %s3336_s15, 2  ;;  %p153_p5 = scmp.ne.s32.totalorder %s2439_s13, %s2435_s12 }
  0x48   : > { %p2713_p1 = por %p3277_p4, %p147_p2  ;;  %p154_p6 = scmp.eq.s32.totalorder %s1761_s30, 7 }
  0x49   : > { %s194_s7 = sand.u32 1, %s2455_s17   ;;  %s3338_s15 = smov (%p44_p3, %s3336_s15), 0 }
  0x4a   : > { %s3278_s4 = scalar_select %p2713_p1, 1, 0 }
  0x4b   : > { %3280 = sst [smem:[#allocation23_spill]] %s3338_s15  ;;  %s137_s5 = sadd.s32 1, %s2443_s14 }
  0x4c   : > { %3279 = sst [smem:[#allocation22_spill]] %s3278_s4  ;;  %p2723_p9 = por %p154_p6, %p153_p5 }
  0x4d   : > { %s46_s2 = ssub.s32 %s2491_s26, %s3338_s15  ;;  %s1767_s0 = sshll.u32 %s194_s7, 3 }
  0x4e   : > { %s3281_s8 = scalar_select %p2723_p9, 1, 0 }
  0x4f   : > { %s48_s3 = sor.u32 %s47_s28, %s46_s2  ;;  %s76_s9 = sor.u32 %s75_s18, %s46_s2 }
  0x50   : > { %3282 = sst [smem:[#allocation24_spill]] %s3281_s8  ;;  %p49_p10 = scmp.eq.s32.totalorder %s48_s3, 0 }
  0x51   : > { %p77_p12 = scmp.eq.s32.totalorder %s76_s9, 0  ;;  %s134_s25 = sor.u32 %s75_s18, %s48_s3 }
  0x52   : > { %s3283_s30 = sadd.s32 1, %s2467_s20  ;;  %p135_p7 = scmp.eq.s32.totalorder %s134_s25, 0 }
  0x53   : > { %s2732_s12 = scalar_select %p49_p10, %s2467_s20, %s3283_s30  }
  0x54   : > { %s2735_s4 = scalar_select %p77_p12, %s2455_s17, %s79_s29  }
  0x55   : > { %s3284_s13 = sshll.u32 %s2491_s26, 1  ;;  %s198_s10 = scalar_lea.vmem [#allocation5], %s1767_s0 }
  0x56   : > { %s203_s23 = sadd.s32 %s2483_s24, %s3284_s13  ;;  %s207_s8 = sshll.u32 %s198_s10, 4  ;;  %s2748_s8 = int_to_ptr.vmem [resolvable:$true] %s207_s8 }
  0x57   : > { %s1769_s22 = sshll.u32 %s203_s23, 7  ;;  %p3285_p11 = scmp.lt.s32.totalorder %s2495_s27, 8 }
  0x58   : > { %s2741_s15 = scalar_select %p135_p7, %s2443_s14, %s137_s5  }
  0x59   : > { %s2746_s28 = scalar_lea.hbm %s3224_s1, %s1769_s22  ;;  %p2754_p2 = pnand %p3285_p11, %p2698_p13 }
  0x5a   : > { %s195_s0 = scalar_lea.sflag [#allocation6], %s194_s7  ;;  %s2299_s23 = scalar_lea.hbm %s2746_s28, 128 }
  0x5b   : > { %p2300_p4 = scmp.ne.s32.totalorder %s2746_s28, %s2299_s23  ;;  %p2301_p3 = pneg %p2754_p2 }
  0x5c   : > { %s2304_s25 = scalar_lea.hbm %s3224_s1, 512  ;;  %p2305_p13 = scmp.lt.u32.totalorder %s2746_s28, %s3224_s1 }
  0x5d   : > { %p2302_p5 = pnand %p2301_p3, %p2300_p4  ;;  %p2306_p10 = scmp.lt.u32.totalorder %s2304_s25, %s2299_s23 }
  0x5e   : > { %p2308_p7 = scmp.lt.u32.totalorder %s2299_s23, %s2746_s28 }
  0x5f   : > { %p2303_p6 = pneg %p2302_p5  ;;  %p2307_p12 = por %p2306_p10, %p2305_p13 }
  0x61   : > { %p2309_p11 = por %p2308_p7, %p2307_p12 }
  0x63   : > { %p2310_p9 = pnand %p2309_p11, %p2303_p6 }
  0x65   : > { %2313 = shalt.err (!%p2310_p9)
}
  0x66   : > { %s2314_s3 = scalar_lea.vmem %s2748_s8, 128  ;;  %s2498_s18 = smov [#allocation5]  }
  0x67   : > { %p2315_p4 = scmp.ne.s32.totalorder %s2748_s8, %s2314_s3  ;;  %s2319_s29 = sshll.u32 %s2498_s18, 4  ;;  %s2320_s29 = int_to_ptr.vmem [resolvable:$false] %s2319_s29 }
  0x68   : > { %s2321_s10 = scalar_lea.vmem %s2320_s29, 256  ;;  %p2322_p0 = scmp.lt.s32.totalorder %s2748_s8, %s2320_s29 }
  0x69   : > { %p2317_p5 = pnand %p2315_p4, %p2301_p3  ;;  %p2323_p13 = scmp.lt.s32.totalorder %s2321_s10, %s2314_s3 }
  0x6b   : > { %p2318_p1 = pneg %p2317_p5  ;;  %p2324_p10 = por %p2323_p13, %p2322_p0 }
  0x6d   : > { %p2325_p12 = pnand %p2324_p10, %p2318_p1 }
  0x6f   : > { %2328 = shalt.err (!%p2325_p12)
}
  0x70   : > { %2133 = dma.hbm_to_vmem [thread:$0]  (!%p2754_p2), %s2746_s28, 128, %s2748_s8, %s195_s0  }
  0x71   : > { %216 = sbr.rel (%p2672_p8) target bundleno = 830 (0x33e), region = 28  ;;  %s3287_s11 = sld [smem:[#allocation18_spill]] (!%p2672_p8) }
  0x72   : > { %s218_s7 = sand.u32 (!%p2672_p8), 1, %s2463_s19  }
  0x73   : > { %s1771_s5 = sshll.u32 (!%p2672_p8), %s218_s7, 3  ;;  %s219_s2 = scalar_lea.sflag (!%p2672_p8), [#allocation3], %s218_s7 }
  0x74   : > { %s222_s30 = scalar_lea.vmem (!%p2672_p8), [#allocation2], %s1771_s5 }
  0x77   : > { %p3288_p9 = scmp.ne.s32.totalorder (!%p2672_p8), %s3287_s11, 0 }
  0x79   : > { %2422 = dma.done.wait (%p3288_p9), %s219_s2, 128  }
  0x7a   : > { %2424 = vsyncadd (%p3288_p9), %s219_s2, 4294967168  ;;  %s3289_s23 = sld [smem:[#allocation13_spill]]  ;;  %s3290_s16 = sld [smem:[#allocation20_spill]] }
  0x80   : > { %s227_s13 = sand.u32 1, %s3289_s23   ;;  %p3291_p0 = scmp.ne.s32.totalorder %s3290_s16, 0 }
  0x81   : > { %s1772_s22 = sshll.u32 %s227_s13, 3  ;;  %s228_s25 = scalar_lea.sflag [#allocation6], %s227_s13 }
  0x82   : > { %s231_s8 = scalar_lea.vmem [#allocation5], %s1772_s22 }
  0x83   : > { %2426 = dma.done.wait (%p3291_p0), %s228_s25, 128  }
  0x84   : > { %2428 = vsyncadd (%p3291_p0), %s228_s25, 4294967168  ;;  %s3292_s21 = sld [smem:[#allocation15_spill]]  ;;  %s3293_s28 = sld [smem:[#allocation16_spill]]  ;;  %v278_v0 = vld [vmem:[%s231_s8] sm:$0xff]  ;;  %v277_v1 = vld [vmem:[%s222_s30] sm:$0xff]  ;;  %vm311_vm0 = vcmask 64512  }
  0x85   : > { %v2795_v2 = vand.u32 4294901760, %v278_v0  ;;  %279 = vxpose.xlu0.b32.start.end [1/1] (short) %v277_v1, 128  ;;  %s3294_s10 = sld [smem:[#allocation26_spill]]  ;;  %s3295_s7 = sld [smem:[#allocation12_spill]] }
  0x86   : > { %s3296_s30 = sld [smem:[#allocation14_spill]] }
  0x87   : > { %1963 = vmatprep.subr.mxu0 %v2795_v2  ;;  %1885 = vmatprep.subr.mxu1 %v2795_v2  ;;  %v2810_v3 = vsub.f32 %v278_v0, %v2795_v2 }
  0x88   : > { %1964 = vmatpush3.msra.mxu0 %v2795_v2  ;;  %1886 = vmatpush3.msra.mxu1 %v2795_v2 }
  0x89   : > { %v589_v4 = vand.u32 4294901760, %v2810_v3 }
  0x8a   : > { %s1773_s0 = sshll.u32 %s3292_s21, 4  ;;  %p268_p8 = scmp.lt.s32.totalorder %s3293_s28, 1 }
  0x8b   : > { %p270_p1 = scmp.lt.s32.totalorder %s1773_s0, 31  ;;  %v590_v5 = vsub.f32 %v2810_v3, %v589_v4  ;;  %1989 = vmatprep.subr.mxu0 %v589_v4  ;;  %s265_s5 = sand.u32 1, %s3295_s7  }
  0x8c   : > { %s3340_s28 = smov (!%p268_p8, %s3293_s28), 1  ;;  %s3013_s2 = scalar_lea.vmem [#allocation7], %s265_s5 }
  0x8d   : > { %s3342_s0 = smov (!%p270_p1, %s1773_s0), 31  ;;  %s1774_s6 = sshll.u32 %s3340_s28, 5  ;;  %v591_v6 = vand.u32 4294901760, %v590_v5 }
  0x8e   : > { %s273_s9 = sadd.s32 %s1774_s6, %s3342_s0  ;;  %p1776_p2 = scmp.ne.s32.totalorder %s3296_s30, 0 }
  0x8f   : > { %s1775_s3 = sshll.u32 %s273_s9, 3  ;;  %1911 = vmatprep.subr.mxu1 %v591_v6  ;;  %vm1509_vm1 = vcmask (!%p1776_p2), 7168  }
  0x90   : > { %s2807_s11 = scalar_lea.vmem %s3294_s10, %s1775_s3 }
 0x105   : > { %v295_v7 = vpop.trf.xlu0 }
 0x106   : > { %v313_v8 = vsel %vm311_vm0, %v295_v7, 0 }
 0x107   : > { %v2815_v9 = vand.u32 4294901760, %v313_v8 }
 0x109   : > { %v2818_v10 = vsub.f32 %v313_v8, %v2815_v9  ;;  %v296_v11 = vpop.trf.xlu0 }
 0x10a   : > { %v316_v12 = vsel %vm311_vm0, %v296_v11, 0 }
 0x10b   : > { %v2821_v13 = vand.u32 4294901760, %v316_v12  ;;  %v428_v14 = vand.u32 4294901760, %v2818_v10 }
 0x10d   : > { %v2825_v15 = vsub.f32 %v316_v12, %v2821_v13  ;;  %1965 = vmatprep.mubr.f32.mxu0 %v428_v14  ;;  %v297_v16 = vpop.trf.xlu0  ;;  %v429_v17 = vsub.f32 %v2818_v10, %v428_v14 }
 0x10e   : > { %v319_v18 = vsel %vm311_vm0, %v297_v16, 0 }
 0x10f   : > { %v2829_v19 = vand.u32 4294901760, %v319_v18  ;;  %v430_v20 = vand.u32 4294901760, %v429_v17  ;;  %v438_v21 = vand.u32 4294901760, %v2825_v15 }
 0x111   : > { %v2833_v22 = vsub.f32 %v319_v18, %v2829_v19  ;;  %1887 = vmatprep.mubr.f32.mxu1 %v430_v20  ;;  %1966 = vmatmul.mubr.f32.vlgmr.msra.gmra.mrb[0].mxu0 %v438_v21  ;;  %v298_v23 = vpop.trf.xlu0  ;;  %v439_v24 = vsub.f32 %v2825_v15, %v438_v21 }
 0x112   : > { %v322_v25 = vsel %vm311_vm0, %v298_v23, 0  ;;  %1990 = vmatpush3.msra.mxu0 %v589_v4 }
 0x113   : > { %v2837_v26 = vand.u32 4294901760, %v322_v25  ;;  %v440_v27 = vand.u32 4294901760, %v439_v24  ;;  %v448_v28 = vand.u32 4294901760, %v2833_v22  ;;  %2015 = vmatprep.subr.mxu0 %v2795_v2 }
 0x115   : > { %v2842_v29 = vsub.f32 %v322_v25, %v2837_v26  ;;  %1888 = vmatmul.mubr.f32.vlgmr.msra.gmra.mrb[0].mxu1 %v440_v27  ;;  %1968 = vmatprep.mubr.f32.mxu0 %v448_v28  ;;  %v299_v30 = vpop.trf.xlu0  ;;  %v449_v31 = vsub.f32 %v2833_v22, %v448_v28 }
 0x116   : > { %v325_v32 = vsel %vm311_vm0, %v299_v30, 0  ;;  %1912 = vmatpush3.msra.mxu1 %v591_v6 }
 0x117   : > { %v2846_v33 = vand.u32 4294901760, %v325_v32  ;;  %v450_v34 = vand.u32 4294901760, %v449_v31  ;;  %v458_v35 = vand.u32 4294901760, %v2842_v29  ;;  %1937 = vmatprep.subr.mxu1 %v2810_v3 }
 0x119   : > { %v2851_v36 = vsub.f32 %v325_v32, %v2846_v33  ;;  %1890 = vmatprep.mubr.f32.mxu1 %v450_v34  ;;  %1969 = vmatmul.mubr.f32.gmra.mrb[2].mxu0 %v458_v35  ;;  %v300_v37 = vpop.trf.xlu0  ;;  %v459_v38 = vsub.f32 %v2842_v29, %v458_v35 }
 0x11a   : > { %v328_v39 = vsel %vm311_vm0, %v300_v37, 0 }
 0x11b   : > { %v2855_v40 = vand.u32 4294901760, %v328_v39  ;;  %v460_v41 = vand.u32 4294901760, %v459_v38  ;;  %v468_v42 = vand.u32 4294901760, %v2851_v36 }
 0x11d   : > { %v2859_v43 = vsub.f32 %v328_v39, %v2855_v40  ;;  %1891 = vmatmul.mubr.f32.gmra.mrb[2].mxu1 %v460_v41  ;;  %1971 = vmatprep.mubr.f32.mxu0 %v468_v42  ;;  %v301_v44 = vpop.trf.xlu0  ;;  %v469_v45 = vsub.f32 %v2851_v36, %v468_v42 }
 0x11e   : > { %v331_v46 = vsel %vm311_vm0, %v301_v44, 0 }
 0x11f   : > { %v2863_v47 = vand.u32 4294901760, %v331_v46  ;;  %v470_v48 = vand.u32 4294901760, %v469_v45  ;;  %v478_v49 = vand.u32 4294901760, %v2859_v43 }
 0x121   : > { %v2867_v50 = vsub.f32 %v331_v46, %v2863_v47  ;;  %1893 = vmatprep.mubr.f32.mxu1 %v470_v48  ;;  %1972 = vmatmul.mubr.f32.gmra.mrb[4].mxu0 %v478_v49  ;;  %v302_v51 = vpop.trf.xlu0  ;;  %v479_v52 = vsub.f32 %v2859_v43, %v478_v49 }
 0x122   : > { %v334_v53 = vsel %vm311_vm0, %v302_v51, 0 }
 0x123   : > { %v2871_v54 = vand.u32 4294901760, %v334_v53  ;;  %v480_v55 = vand.u32 4294901760, %v479_v52  ;;  %v488_v56 = vand.u32 4294901760, %v2867_v50 }
 0x125   : > { %v2875_v57 = vsub.f32 %v334_v53, %v2871_v54  ;;  %1894 = vmatmul.mubr.f32.gmra.mrb[4].mxu1 %v480_v55  ;;  %1974 = vmatprep.mubr.f32.mxu0 %v488_v56  ;;  %v303_v58 = vpop.trf.xlu0  ;;  %v489_v59 = vsub.f32 %v2867_v50, %v488_v56 }
 0x126   : > { %v337_v60 = vsel %vm311_vm0, %v303_v58, 0 }
 0x127   : > { %v2879_v61 = vand.u32 4294901760, %v337_v60  ;;  %v490_v62 = vand.u32 4294901760, %v489_v59  ;;  %v498_v63 = vand.u32 4294901760, %v2875_v57 }
 0x129   : > { %v2883_v0 = vsub.f32 %v337_v60, %v2879_v61  ;;  %1896 = vmatprep.mubr.f32.mxu1 %v490_v62  ;;  %1975 = vmatmul.mubr.f32.gmra.mrb[6].mxu0 %v498_v63  ;;  %v304_v1 = vpop.trf.xlu0  ;;  %v499_v4 = vsub.f32 %v2875_v57, %v498_v63 }
 0x12a   : > { %v340_v5 = vsel %vm311_vm0, %v304_v1, 0 }
 0x12b   : > { %v2887_v6 = vand.u32 4294901760, %v340_v5  ;;  %v500_v7 = vand.u32 4294901760, %v499_v4  ;;  %v508_v8 = vand.u32 4294901760, %v2883_v0 }
 0x12d   : > { %v2891_v11 = vsub.f32 %v340_v5, %v2887_v6  ;;  %1897 = vmatmul.mubr.f32.gmra.mrb[6].mxu1 %v500_v7  ;;  %1977 = vmatprep.mubr.f32.mxu0 %v508_v8  ;;  %v305_v12 = vpop.trf.xlu0  ;;  %v509_v14 = vsub.f32 %v2883_v0, %v508_v8 }
 0x12e   : > { %v343_v16 = vsel %vm311_vm0, %v305_v12, 0 }
 0x12f   : > { %v2895_v17 = vand.u32 4294901760, %v343_v16  ;;  %v510_v18 = vand.u32 4294901760, %v509_v14  ;;  %v518_v20 = vand.u32 4294901760, %v2891_v11 }
 0x131   : > { %v2899_v21 = vsub.f32 %v343_v16, %v2895_v17  ;;  %1899 = vmatprep.mubr.f32.mxu1 %v510_v18  ;;  %1978 = vmatmul.mubr.f32.gmra.mrb[8].mxu0 %v518_v20  ;;  %v306_v23 = vpop.trf.xlu0  ;;  %v519_v24 = vsub.f32 %v2891_v11, %v518_v20 }
 0x132   : > { %v346_v25 = vsel %vm311_vm0, %v306_v23, 0 }
 0x133   : > { %v2903_v27 = vand.u32 4294901760, %v346_v25  ;;  %v520_v28 = vand.u32 4294901760, %v519_v24  ;;  %v528_v30 = vand.u32 4294901760, %v2899_v21 }
 0x135   : > { %v2907_v31 = vsub.f32 %v346_v25, %v2903_v27  ;;  %1900 = vmatmul.mubr.f32.gmra.mrb[8].mxu1 %v520_v28  ;;  %1980 = vmatprep.mubr.f32.mxu0 %v528_v30  ;;  %v307_v32 = vpop.trf.xlu0  ;;  %v529_v34 = vsub.f32 %v2899_v21, %v528_v30 }
 0x136   : > { %v349_v35 = vsel %vm311_vm0, %v307_v32, 0 }
 0x137   : > { %v2911_v37 = vand.u32 4294901760, %v349_v35  ;;  %v530_v38 = vand.u32 4294901760, %v529_v34  ;;  %v538_v39 = vand.u32 4294901760, %v2907_v31 }
 0x139   : > { %v2915_v41 = vsub.f32 %v349_v35, %v2911_v37  ;;  %1902 = vmatprep.mubr.f32.mxu1 %v530_v38  ;;  %1981 = vmatmul.mubr.f32.gmra.mrb[10].mxu0 %v538_v39  ;;  %v308_v42 = vpop.trf.xlu0  ;;  %v539_v44 = vsub.f32 %v2907_v31, %v538_v39 }
 0x13a   : > { %v352_v45 = vsel %vm311_vm0, %v308_v42, 0 }
 0x13b   : > { %v2919_v46 = vand.u32 4294901760, %v352_v45  ;;  %v540_v48 = vand.u32 4294901760, %v539_v44  ;;  %v548_v49 = vand.u32 4294901760, %v2915_v41 }
 0x13d   : > { %v2923_v51 = vsub.f32 %v352_v45, %v2919_v46  ;;  %1903 = vmatmul.mubr.f32.gmra.mrb[10].mxu1 %v540_v48  ;;  %1983 = vmatprep.mubr.f32.mxu0 %v548_v49  ;;  %v309_v52 = vpop.trf.xlu0  ;;  %v549_v53 = vsub.f32 %v2915_v41, %v548_v49 }
 0x13e   : > { %v355_v55 = vsel %vm311_vm0, %v309_v52, 0 }
 0x13f   : > { %v2927_v56 = vand.u32 4294901760, %v355_v55  ;;  %v550_v58 = vand.u32 4294901760, %v549_v53  ;;  %v558_v59 = vand.u32 4294901760, %v2923_v51 }
 0x141   : > { %v2931_v60 = vsub.f32 %v355_v55, %v2927_v56  ;;  %1905 = vmatprep.mubr.f32.mxu1 %v550_v58  ;;  %1984 = vmatmul.mubr.f32.gmra.mrb[12].mxu0 %v558_v59  ;;  %v310_v62 = vpop.trf.xlu0  ;;  %v559_v63 = vsub.f32 %v2923_v51, %v558_v59 }
 0x142   : > { %v358_v1 = vsel %vm311_vm0, %v310_v62, 0 }
 0x143   : > { %v2935_v4 = vand.u32 4294901760, %v358_v1  ;;  %v560_v5 = vand.u32 4294901760, %v559_v63  ;;  %v568_v7 = vand.u32 4294901760, %v2931_v60 }
 0x145   : > { %v2939_v8 = vsub.f32 %v358_v1, %v2935_v4  ;;  %1906 = vmatmul.mubr.f32.gmra.mrb[12].mxu1 %v560_v5  ;;  %1986 = vmatprep.mubr.f32.mxu0 %v568_v7  ;;  %v569_v12 = vsub.f32 %v2931_v60, %v568_v7 }
 0x147   : > { %v570_v14 = vand.u32 4294901760, %v569_v12  ;;  %v578_v16 = vand.u32 4294901760, %v2939_v8 }
 0x149   : > { %1908 = vmatprep.mubr.f32.mxu1 %v570_v14  ;;  %1987 = vmatmul.mubr.f32.gmra.mrb[14].mxu0 %v578_v16  ;;  %v579_v18 = vsub.f32 %v2939_v8, %v578_v16 }
 0x14a   : > { %1991 = vmatprep.mubr.f32.mxu0 %v2815_v9 }
 0x14b   : > { %v580_v20 = vand.u32 4294901760, %v579_v18 }
 0x14d   : > { %1909 = vmatmul.mubr.f32.gmra.mrb[14].mxu1 %v580_v20  ;;  %1992 = vmatmul.mubr.f32.vlgmr.msra.gmra.mrb[0].mxu0 %v2821_v13 }
 0x14e   : > { %1913 = vmatprep.mubr.f32.mxu1 %v2815_v9  ;;  %1994 = vmatprep.mubr.f32.mxu0 %v2829_v19 }
 0x14f   : > { %2016 = vmatpush3.msra.mxu0 %v2795_v2 }
 0x151   : > { %1914 = vmatmul.mubr.f32.vlgmr.msra.gmra.mrb[0].mxu1 %v2821_v13  ;;  %1995 = vmatmul.mubr.f32.gmra.mrb[2].mxu0 %v2837_v26 }
 0x152   : > { %1938 = vmatpush3.msra.mxu1 %v2810_v3  ;;  %1916 = vmatprep.mubr.f32.mxu1 %v2829_v19 }
 0x153   : > { %1997 = vmatprep.mubr.f32.mxu0 %v2846_v33 }
 0x155   : > { %1917 = vmatmul.mubr.f32.gmra.mrb[2].mxu1 %v2837_v26  ;;  %1998 = vmatmul.mubr.f32.gmra.mrb[4].mxu0 %v2855_v40 }
 0x156   : > { %1919 = vmatprep.mubr.f32.mxu1 %v2846_v33  ;;  %2000 = vmatprep.mubr.f32.mxu0 %v2863_v47 }
 0x159   : > { %1920 = vmatmul.mubr.f32.gmra.mrb[4].mxu1 %v2855_v40  ;;  %2001 = vmatmul.mubr.f32.gmra.mrb[6].mxu0 %v2871_v54 }
 0x15a   : > { %1922 = vmatprep.mubr.f32.mxu1 %v2863_v47  ;;  %2003 = vmatprep.mubr.f32.mxu0 %v2879_v61 }
 0x15d   : > { %1923 = vmatmul.mubr.f32.gmra.mrb[6].mxu1 %v2871_v54  ;;  %2004 = vmatmul.mubr.f32.gmra.mrb[8].mxu0 %v2887_v6 }
 0x15e   : > { %1925 = vmatprep.mubr.f32.mxu1 %v2879_v61  ;;  %2006 = vmatprep.mubr.f32.mxu0 %v2895_v17 }
 0x161   : > { %1926 = vmatmul.mubr.f32.gmra.mrb[8].mxu1 %v2887_v6  ;;  %2007 = vmatmul.mubr.f32.gmra.mrb[10].mxu0 %v2903_v27 }
 0x162   : > { %1928 = vmatprep.mubr.f32.mxu1 %v2895_v17  ;;  %2009 = vmatprep.mubr.f32.mxu0 %v2911_v37 }
 0x165   : > { %1929 = vmatmul.mubr.f32.gmra.mrb[10].mxu1 %v2903_v27  ;;  %2010 = vmatmul.mubr.f32.gmra.mrb[12].mxu0 %v2919_v46 }
 0x166   : > { %1931 = vmatprep.mubr.f32.mxu1 %v2911_v37  ;;  %2012 = vmatprep.mubr.f32.mxu0 %v2927_v56 }
 0x169   : > { %1932 = vmatmul.mubr.f32.gmra.mrb[12].mxu1 %v2919_v46  ;;  %2013 = vmatmul.mubr.f32.gmra.mrb[14].mxu0 %v2935_v4 }
 0x16a   : > { %1934 = vmatprep.mubr.f32.mxu1 %v2927_v56  ;;  %2017 = vmatprep.mubr.f32.mxu0 %v2815_v9 }
 0x16d   : > { %1935 = vmatmul.mubr.f32.gmra.mrb[14].mxu1 %v2935_v4  ;;  %2018 = vmatmul.mubr.f32.vlgmr.msra.gmra.mrb[0].mxu0 %v2821_v13 }
 0x16e   : > { %1939 = vmatprep.mubr.f32.mxu1 %v2818_v10  ;;  %2020 = vmatprep.mubr.f32.mxu0 %v2829_v19 }
 0x171   : > { %1940 = vmatmul.mubr.f32.vlgmr.msra.gmra.mrb[0].mxu1 %v2825_v15  ;;  %2021 = vmatmul.mubr.f32.gmra.mrb[2].mxu0 %v2837_v26 }
 0x172   : > { %1942 = vmatprep.mubr.f32.mxu1 %v2833_v22  ;;  %2023 = vmatprep.mubr.f32.mxu0 %v2846_v33 }
 0x175   : > { %1943 = vmatmul.mubr.f32.gmra.mrb[2].mxu1 %v2842_v29  ;;  %2024 = vmatmul.mubr.f32.gmra.mrb[4].mxu0 %v2855_v40 }
 0x176   : > { %1945 = vmatprep.mubr.f32.mxu1 %v2851_v36  ;;  %2026 = vmatprep.mubr.f32.mxu0 %v2863_v47 }
 0x179   : > { %1946 = vmatmul.mubr.f32.gmra.mrb[4].mxu1 %v2859_v43  ;;  %2027 = vmatmul.mubr.f32.gmra.mrb[6].mxu0 %v2871_v54 }
 0x17a   : > { %1948 = vmatprep.mubr.f32.mxu1 %v2867_v50  ;;  %2029 = vmatprep.mubr.f32.mxu0 %v2879_v61 }
 0x17d   : > { %1949 = vmatmul.mubr.f32.gmra.mrb[6].mxu1 %v2875_v57  ;;  %2030 = vmatmul.mubr.f32.gmra.mrb[8].mxu0 %v2887_v6 }
 0x17e   : > { %1951 = vmatprep.mubr.f32.mxu1 %v2883_v0  ;;  %2032 = vmatprep.mubr.f32.mxu0 %v2895_v17 }
 0x181   : > { %1952 = vmatmul.mubr.f32.gmra.mrb[8].mxu1 %v2891_v11  ;;  %2033 = vmatmul.mubr.f32.gmra.mrb[10].mxu0 %v2903_v27 }
 0x182   : > { %1954 = vmatprep.mubr.f32.mxu1 %v2899_v21  ;;  %2035 = vmatprep.mubr.f32.mxu0 %v2911_v37 }
 0x185   : > { %1955 = vmatmul.mubr.f32.gmra.mrb[10].mxu1 %v2907_v31  ;;  %2036 = vmatmul.mubr.f32.gmra.mrb[12].mxu0 %v2919_v46 }
 0x186   : > { %1957 = vmatprep.mubr.f32.mxu1 %v2915_v41  ;;  %2038 = vmatprep.mubr.f32.mxu0 %v2927_v56 }
 0x189   : > { %1958 = vmatmul.mubr.f32.gmra.mrb[12].mxu1 %v2923_v51  ;;  %2039 = vmatmul.mubr.f32.gmra.mrb[14].mxu0 %v2935_v4 }
 0x18a   : > { %1960 = vmatprep.mubr.f32.mxu1 %v2931_v60 }
 0x18d   : > { %1961 = vmatmul.mubr.f32.gmra.mrb[14].mxu1 %v2939_v8 }
 0x240   : > { %v2019_v2 = vpop.f32.mrb[0].mxu0 }
 0x241   : > { %v1357_v3 = vpop.f32.mrb[1].mxu0 }
 0x244   : > { %v1941_v9 = vpop.f32.mrb[0].mxu1  ;;  %v2022_v10 = vpop.f32.mrb[2].mxu0 }
 0x245   : > { %v2041_v13 = vadd.f32 %v2019_v2, %v1941_v9  ;;  %v822_v15 = vpop.f32.mrb[1].mxu1  ;;  %v1369_v19 = vpop.f32.mrb[3].mxu0 }
 0x246   : > { %v2042_v22 = vadd.f32 %v1357_v3, %v822_v15 }
 0x247   : > { %1453 = vmin.xlane.f32.xlu1 %v2041_v13 }
 0x248   : > { %v2025_v26 = vpop.f32.mrb[4].mxu0  ;;  %1451 = vmin.xlane.f32.xlu0 %v2042_v22  ;;  %v1944_v29 = vpop.f32.mrb[2].mxu1 }
 0x249   : > { %v2043_v33 = vadd.f32 %v2022_v10, %v1944_v29  ;;  %v836_v36 = vpop.f32.mrb[3].mxu1  ;;  %v1381_v40 = vpop.f32.mrb[5].mxu0 }
 0x24a   : > { %v2044_v43 = vadd.f32 %v1369_v19, %v836_v36 }
 0x24b   : > { %1457 = vmin.xlane.f32.xlu1 %v2043_v33 }
 0x24c   : > { %v1947_v47 = vpop.f32.mrb[4].mxu1  ;;  %v2028_v50 = vpop.f32.mrb[6].mxu0 }
 0x24d   : > { %v2045_v54 = vadd.f32 %v2025_v26, %v1947_v47  ;;  %v850_v57 = vpop.f32.mrb[5].mxu1  ;;  %v1393_v61 = vpop.f32.mrb[7].mxu0 }
 0x24e   : > { %v2046_v0 = vadd.f32 %v1381_v40, %v850_v57 }
 0x24f   : > { %v1484_v6 = vmin.f32 %v2041_v13, %v2045_v54  ;;  %1455 = vmin.xlane.f32.xlu1 %v2044_v43 }
 0x250   : > { %v1483_v11 = vmin.f32 %v2042_v22, %v2046_v0  ;;  %v1950_v17 = vpop.f32.mrb[6].mxu1  ;;  %v2031_v21 = vpop.f32.mrb[8].mxu0 }
 0x251   : > { %v2047_v23 = vadd.f32 %v2028_v50, %v1950_v17  ;;  %v864_v24 = vpop.f32.mrb[7].mxu1  ;;  %v1405_v25 = vpop.f32.mrb[9].mxu0 }
 0x252   : > { %v2048_v27 = vadd.f32 %v1393_v61, %v864_v24 }
 0x253   : > { %v1486_v28 = vmin.f32 %v2043_v33, %v2047_v23  ;;  %1461 = vmin.xlane.f32.xlu1 %v2045_v54 }
 0x254   : > { %v1485_v30 = vmin.f32 %v2044_v43, %v2048_v27  ;;  %v1953_v31 = vpop.f32.mrb[8].mxu1  ;;  %v2034_v32 = vpop.f32.mrb[10].mxu0 }
 0x255   : > { %v2049_v34 = vadd.f32 %v2031_v21, %v1953_v31  ;;  %v878_v35 = vpop.f32.mrb[9].mxu1  ;;  %v1417_v37 = vpop.f32.mrb[11].mxu0 }
 0x256   : > { %v2050_v38 = vadd.f32 %v1405_v25, %v878_v35 }
 0x257   : > { %v1488_v39 = vmin.f32 %v1484_v6, %v2049_v34  ;;  %1459 = vmin.xlane.f32.xlu1 %v2046_v0 }
 0x258   : > { %v1487_v41 = vmin.f32 %v1483_v11, %v2050_v38  ;;  %v1956_v42 = vpop.f32.mrb[10].mxu1  ;;  %v2037_v44 = vpop.f32.mrb[12].mxu0 }
 0x259   : > { %v2051_v45 = vadd.f32 %v2034_v32, %v1956_v42  ;;  %v892_v46 = vpop.f32.mrb[11].mxu1  ;;  %v1429_v48 = vpop.f32.mrb[13].mxu0 }
 0x25a   : > { %v2052_v49 = vadd.f32 %v1417_v37, %v892_v46 }
 0x25b   : > { %v1490_v51 = vmin.f32 %v1486_v28, %v2051_v45  ;;  %1465 = vmin.xlane.f32.xlu1 %v2047_v23 }
 0x25c   : > { %v1489_v52 = vmin.f32 %v1485_v30, %v2052_v49  ;;  %v1959_v53 = vpop.f32.mrb[12].mxu1  ;;  %v2040_v55 = vpop.f32.mrb[14].mxu0 }
 0x25d   : > { %v2053_v56 = vadd.f32 %v2037_v44, %v1959_v53  ;;  %v906_v58 = vpop.f32.mrb[13].mxu1  ;;  %v1441_v59 = vpop.f32.mrb[15].mxu0 }
 0x25e   : > { %v2054_v60 = vadd.f32 %v1429_v48, %v906_v58 }
 0x25f   : > { %v1492_v62 = vmin.f32 %v1488_v39, %v2053_v56  ;;  %1463 = vmin.xlane.f32.xlu1 %v2048_v27 }
 0x260   : > { %v1491_v63 = vmin.f32 %v1487_v41, %v2054_v60  ;;  %v1962_v1 = vpop.f32.mrb[14].mxu1 }
 0x261   : > { %v2055_v4 = vadd.f32 %v2040_v55, %v1962_v1  ;;  %v920_v5 = vpop.f32.mrb[15].mxu1 }
 0x262   : > { %v1495_v7 = vmin.f32 %v1491_v63, %v1492_v62  ;;  %v2056_v8 = vadd.f32 %v1441_v59, %v920_v5 }
 0x263   : > { %v1494_v12 = vmin.f32 %v1490_v51, %v2055_v4  ;;  %1469 = vmin.xlane.f32.xlu1 %v2049_v34 }
 0x264   : > { %v1493_v14 = vmin.f32 %v1489_v52, %v2056_v8 }
 0x266   : > { %v1496_v16 = vmin.f32 %v1493_v14, %v1494_v12 }
 0x267   : > { %1467 = vmin.xlane.f32.xlu1 %v2050_v38 }
 0x268   : > { %v1497_v18 = vmin.f32 %v1495_v7, %v1496_v16 }
 0x26a   : > { %v1498_v20 = vrot.slane %v1497_v18, 4 }
 0x26b   : > { %1473 = vmin.xlane.f32.xlu1 %v2051_v45 }
 0x26c   : > { %v1499_v2 = vmin.f32 %v1497_v18, %v1498_v20 }
 0x26e   : > { %v1500_v3 = vrot.slane %v1499_v2, 2 }
 0x26f   : > { %1471 = vmin.xlane.f32.xlu1 %v2052_v49 }
 0x270   : > { %v1501_v9 = vmin.f32 %v1499_v2, %v1500_v3 }
 0x272   : > { %v1502_v10 = vrot.slane %v1501_v9, 1 }
 0x273   : > { %1477 = vmin.xlane.f32.xlu1 %v2053_v56 }
 0x274   : > { %v1503_v13 = vmin.f32 %v1501_v9, %v1502_v10 }
 0x276   : > { %1504 = vst [vmem:[%s3013_s2] sm:$0x1] %v1503_v13 }
 0x277   : > { %1475 = vmin.xlane.f32.xlu1 %v2054_v60 }
 0x27b   : > { %1479 = vmin.xlane.f32.xlu1 %v2056_v8 }
 0x27f   : > { %1481 = vmin.xlane.f32.xlu1 %v2055_v4 }
 0x2d4   : > { %v1454_v15 = vpop.xlane.xlu1 %1453 }
 0x2d5   : > { %v1452_v19 = vpop.xlane.xlu0 %1451  ;;  %1511 = vst.msk [vmem:[%s2807_s11 + $0x8] sm:$0xff] (!%p1776_p2), %vm1509_vm1, %v1454_v15 }
 0x2d6   : > { %1510 = vst.msk [vmem:[%s2807_s11] sm:$0xff] (!%p1776_p2), %vm1509_vm1, %v1452_v19 }
 0x2d8   : > { %v1458_v22 = vpop.xlane.xlu1 %1457 }
 0x2d9   : > { %1513 = vst.msk [vmem:[%s2807_s11 + $0x18] sm:$0xff] (!%p1776_p2), %vm1509_vm1, %v1458_v22 }
 0x2dc   : > { %v1456_v26 = vpop.xlane.xlu1 %1455 }
 0x2dd   : > { %1512 = vst.msk [vmem:[%s2807_s11 + $0x10] sm:$0xff] (!%p1776_p2), %vm1509_vm1, %v1456_v26 }
 0x2e0   : > { %v1462_v29 = vpop.xlane.xlu1 %1461 }
 0x2e1   : > { %1515 = vst.msk [vmem:[%s2807_s11 + $0x28] sm:$0xff] (!%p1776_p2), %vm1509_vm1, %v1462_v29 }
 0x2e4   : > { %v1460_v33 = vpop.xlane.xlu1 %1459 }
 0x2e5   : > { %1514 = vst.msk [vmem:[%s2807_s11 + $0x20] sm:$0xff] (!%p1776_p2), %vm1509_vm1, %v1460_v33 }
 0x2e8   : > { %v3016_v36 = vpop.xlane.xlu1 %1465 }
 0x2e9   : > { %1517 = vst.msk [vmem:[%s2807_s11 + $0x38] sm:$0xff] (!%p1776_p2), %vm1509_vm1, %v3016_v36 }
 0x2ec   : > { %v3018_v40 = vpop.xlane.xlu1 %1463 }
 0x2ed   : > { %1516 = vst.msk [vmem:[%s2807_s11 + $0x30] sm:$0xff] (!%p1776_p2), %vm1509_vm1, %v3018_v40 }
 0x2f0   : > { %v3020_v43 = vpop.xlane.xlu1 %1469 }
 0x2f1   : > { %1519 = vst.msk [vmem:[%s2807_s11 + $0x48] sm:$0xff] (!%p1776_p2), %vm1509_vm1, %v3020_v43 }
 0x2f4   : > { %v3022_v47 = vpop.xlane.xlu1 %1467 }
 0x2f5   : > { %1518 = vst.msk [vmem:[%s2807_s11 + $0x40] sm:$0xff] (!%p1776_p2), %vm1509_vm1, %v3022_v47 }
 0x2f8   : > { %v3024_v50 = vpop.xlane.xlu1 %1473 }
 0x2f9   : > { %1521 = vst.msk [vmem:[%s2807_s11 + $0x58] sm:$0xff] (!%p1776_p2), %vm1509_vm1, %v3024_v50 }
 0x2fc   : > { %v3026_v54 = vpop.xlane.xlu1 %1471 }
 0x2fd   : > { %1520 = vst.msk [vmem:[%s2807_s11 + $0x50] sm:$0xff] (!%p1776_p2), %vm1509_vm1, %v3026_v54 }
 0x300   : > { %v3028_v57 = vpop.xlane.xlu1 %1477 }
 0x301   : > { %1523 = vst.msk [vmem:[%s2807_s11 + $0x68] sm:$0xff] (!%p1776_p2), %vm1509_vm1, %v3028_v57 }
 0x304   : > { %v3030_v61 = vpop.xlane.xlu1 %1475 }
 0x305   : > { %1522 = vst.msk [vmem:[%s2807_s11 + $0x60] sm:$0xff] (!%p1776_p2), %vm1509_vm1, %v3030_v61 }
 0x306   : > { %1508 = sbr.rel (%p1776_p2) target bundleno = 782 (0x30e), region = 40 }
 0x308   : > { %v3032_v0 = vpop.xlane.xlu1 %1479 }
 0x309   : > { %1524 = vst.msk [vmem:[%s2807_s11 + $0x70] sm:$0xff] (!%p1776_p2), %vm1509_vm1, %v3032_v0 }
 0x30c   : > { %v3034_v6 = vpop.xlane.xlu1 %1481 }
 0x30d   : > { %1525 = vst.msk [vmem:[%s2807_s11 + $0x78] sm:$0xff] %vm1509_vm1, %v3034_v6 }
 0x30e PF: > { %s3297_s23 = sld [smem:[#allocation14_spill]] }
 0x314   : > { %p1777_p3 = scmp.eq.s32.totalorder %s3297_s23, 0 }
 0x315   : > { %v1530_v11 = vld [vmem:[%s2807_s11] sm:$0xff] (!%p1777_p3)  ;;  %vm1562_vm2 = vcmask (!%p1777_p3), 7168   ;;  %v1531_v17 = vld [vmem:[%s2807_s11 + $0x8] sm:$0xff] (!%p1777_p3)  ;;  %v1532_v21 = vld [vmem:[%s2807_s11 + $0x10] sm:$0xff] (!%p1777_p3) }
 0x316   : > { %1529 = sbr.rel (%p1777_p3) target bundleno = 800 (0x320), region = 44  ;;  %v1546_v23 = vmin.f32 (!%p1777_p3), %v1530_v11, %v1452_v19  ;;  %v1547_v24 = vmin.f32 (!%p1777_p3), %v1531_v17, %v1454_v15  ;;  %v1548_v25 = vmin.f32 (!%p1777_p3), %v1532_v21, %v1456_v26  ;;  %v1533_v27 = vld [vmem:[%s2807_s11 + $0x18] sm:$0xff] (!%p1777_p3)  ;;  %v1534_v28 = vld [vmem:[%s2807_s11 + $0x20] sm:$0xff] (!%p1777_p3)  ;;  %v1535_v30 = vld [vmem:[%s2807_s11 + $0x28] sm:$0xff] (!%p1777_p3) }
 0x317   : > { %v1549_v31 = vmin.f32 (!%p1777_p3), %v1533_v27, %v1458_v22  ;;  %v1550_v32 = vmin.f32 (!%p1777_p3), %v1534_v28, %v1460_v33  ;;  %v1551_v34 = vmin.f32 (!%p1777_p3), %v1535_v30, %v1462_v29  ;;  %v1536_v35 = vld [vmem:[%s2807_s11 + $0x30] sm:$0xff] (!%p1777_p3)  ;;  %v1537_v37 = vld [vmem:[%s2807_s11 + $0x38] sm:$0xff] (!%p1777_p3)  ;;  %v1538_v38 = vld [vmem:[%s2807_s11 + $0x40] sm:$0xff] (!%p1777_p3) }
 0x318   : > { %1563 = vst.msk [vmem:[%s2807_s11] sm:$0xff] (!%p1777_p3), %vm1562_vm2, %v1546_v23  ;;  %1564 = vst.msk [vmem:[%s2807_s11 + $0x8] sm:$0xff] (!%p1777_p3), %vm1562_vm2, %v1547_v24  ;;  %v1552_v39 = vmin.f32 (!%p1777_p3), %v1536_v35, %v3018_v40  ;;  %v1553_v41 = vmin.f32 (!%p1777_p3), %v1537_v37, %v3016_v36  ;;  %v1554_v42 = vmin.f32 (!%p1777_p3), %v1538_v38, %v3022_v47  ;;  %v1539_v44 = vld [vmem:[%s2807_s11 + $0x48] sm:$0xff] (!%p1777_p3)  ;;  %v1540_v45 = vld [vmem:[%s2807_s11 + $0x50] sm:$0xff] (!%p1777_p3) }
 0x319   : > { %1565 = vst.msk [vmem:[%s2807_s11 + $0x10] sm:$0xff] (!%p1777_p3), %vm1562_vm2, %v1548_v25  ;;  %v1541_v46 = vld [vmem:[%s2807_s11 + $0x58] sm:$0xff] (!%p1777_p3)  ;;  %1566 = vst.msk [vmem:[%s2807_s11 + $0x18] sm:$0xff] (!%p1777_p3), %vm1562_vm2, %v1549_v31  ;;  %v1555_v48 = vmin.f32 (!%p1777_p3), %v1539_v44, %v3020_v43  ;;  %v1556_v49 = vmin.f32 (!%p1777_p3), %v1540_v45, %v3026_v54  ;;  %v1542_v52 = vld [vmem:[%s2807_s11 + $0x60] sm:$0xff] (!%p1777_p3) }
 0x31a   : > { %1567 = vst.msk [vmem:[%s2807_s11 + $0x20] sm:$0xff] (!%p1777_p3), %vm1562_vm2, %v1550_v32  ;;  %1568 = vst.msk [vmem:[%s2807_s11 + $0x28] sm:$0xff] (!%p1777_p3), %vm1562_vm2, %v1551_v34  ;;  %v1557_v51 = vmin.f32 (!%p1777_p3), %v1541_v46, %v3024_v50  ;;  %v1543_v53 = vld [vmem:[%s2807_s11 + $0x68] sm:$0xff] (!%p1777_p3)  ;;  %v1544_v55 = vld [vmem:[%s2807_s11 + $0x70] sm:$0xff] (!%p1777_p3)  ;;  %v1558_v56 = vmin.f32 (!%p1777_p3), %v1542_v52, %v3030_v61 }
 0x31b   : > { %1569 = vst.msk [vmem:[%s2807_s11 + $0x30] sm:$0xff] (!%p1777_p3), %vm1562_vm2, %v1552_v39  ;;  %1570 = vst.msk [vmem:[%s2807_s11 + $0x38] sm:$0xff] (!%p1777_p3), %vm1562_vm2, %v1553_v41  ;;  %v1559_v58 = vmin.f32 (!%p1777_p3), %v1543_v53, %v3028_v57  ;;  %v1560_v59 = vmin.f32 (!%p1777_p3), %v1544_v55, %v3032_v0  ;;  %v1545_v60 = vld [vmem:[%s2807_s11 + $0x78] sm:$0xff] (!%p1777_p3) }
 0x31c   : > { %1571 = vst.msk [vmem:[%s2807_s11 + $0x40] sm:$0xff] (!%p1777_p3), %vm1562_vm2, %v1554_v42  ;;  %1572 = vst.msk [vmem:[%s2807_s11 + $0x48] sm:$0xff] (!%p1777_p3), %vm1562_vm2, %v1555_v48  ;;  %v1561_v62 = vmin.f32 (!%p1777_p3), %v1545_v60, %v3034_v6 }
 0x31d   : > { %1573 = vst.msk [vmem:[%s2807_s11 + $0x50] sm:$0xff] %vm1562_vm2, %v1556_v49  ;;  %1574 = vst.msk [vmem:[%s2807_s11 + $0x58] sm:$0xff] %vm1562_vm2, %v1557_v51 }
 0x31e   : > { %1575 = vst.msk [vmem:[%s2807_s11 + $0x60] sm:$0xff] %vm1562_vm2, %v1558_v56  ;;  %1576 = vst.msk [vmem:[%s2807_s11 + $0x68] sm:$0xff] %vm1562_vm2, %v1559_v58 }
 0x31f   : > { %1577 = vst.msk [vmem:[%s2807_s11 + $0x70] sm:$0xff] %vm1562_vm2, %v1560_v59  ;;  %1578 = vst.msk [vmem:[%s2807_s11 + $0x78] sm:$0xff] %vm1562_vm2, %v1561_v62 }
 0x320 PF: > { %s3298_s16 = sld [smem:[#allocation15_spill]]  ;;  %s3299_s13 = sld [smem:[#allocation14_spill]] }
 0x321   : > { %s3300_s22 = sld [smem:[#allocation16_spill]]  ;;  %s3302_s8 = sld [smem:[#allocation22_spill]] }
 0x322   : > { %s1609_s9 = sshll.u32 %s3013_s2, 4  ;;  %s3303_s10 = sld [smem:[#allocation27_spill]]  ;;  %s3142_s9 = int_to_ptr.vmem [resolvable:$true] %s1609_s9 }
 0x323   : > { %s1589_s7 = scalar_lea.sflag [#allocation4], %s265_s5  ;;  %s2329_s30 = scalar_lea.vmem %s3142_s9, 16 }
 0x324   : > { %p2330_p6 = scmp.ne.s32.totalorder %s3142_s9, %s2329_s30  ;;  %s2499_s23 = smov [#allocation7]  }
 0x326   : > { %s1778_s21 = sshll.u32 %s3298_s16, 1  ;;  %s2333_s16 = sshll.u32 %s2499_s23, 4  ;;  %s2334_s16 = int_to_ptr.vmem [resolvable:$false] %s2333_s16 }
 0x327   : > { %s1603_s28 = sadd.s32 %s3299_s13, %s1778_s21  ;;  %s1779_s0 = sshll.u32 %s3300_s22, 2 }
 0x328   : > { %s1605_s6 = sadd.s32 %s1779_s0, %s1603_s28  ;;  %p3304_p7 = scmp.ne.s32.totalorder %s3302_s8, 0 }
 0x329   : > { %s1780_s3 = sshll.u32 %s1605_s6, 4  ;;  %s2335_s2 = scalar_lea.vmem %s2334_s16, 32 }
 0x32a   : > { %s1607_s11 = scalar_lea.hbm %s3303_s10, %s1780_s3  ;;  %p2331_p11 = pnand %p2330_p6, %p3304_p7 }
 0x32b   : > { %p2336_p5 = scmp.lt.s32.totalorder %s3142_s9, %s2334_s16  ;;  %p2337_p13 = scmp.lt.s32.totalorder %s2335_s2, %s2329_s30 }
 0x32c   : > { %p2332_p4 = pneg %p2331_p11 }
 0x32d   : > { %p2338_p10 = por %p2337_p13, %p2336_p5 }
 0x32f   : > { %p2339_p12 = pnand %p2338_p10, %p2332_p4 }
 0x331   : > { %2342 = shalt.err (!%p2339_p12)
}
 0x332   : > { %s2343_s13 = scalar_lea.hbm %s1607_s11, 16  ;;  %s2347_s25 = scalar_lea.hbm %s3303_s10, 128 }
 0x333   : > { %p2344_p9 = scmp.ne.s32.totalorder %s1607_s11, %s2343_s13  ;;  %p2348_p1 = scmp.lt.u32.totalorder %s1607_s11, %s3303_s10 }
 0x334   : > { %p2349_p2 = scmp.lt.u32.totalorder %s2347_s25, %s2343_s13  ;;  %p2351_p6 = scmp.lt.u32.totalorder %s2343_s13, %s1607_s11 }
 0x335   : > { %p2345_p0 = pnand %p2344_p9, %p3304_p7 }
 0x336   : > { %p2350_p3 = por %p2349_p2, %p2348_p1 }
 0x337   : > { %p2346_p8 = pneg %p2345_p0 }
 0x338   : > { %p2352_p11 = por %p2351_p6, %p2350_p3 }
 0x33a   : > { %p2353_p4 = pnand %p2352_p11, %p2346_p8 }
 0x33c   : > { %2356 = shalt.err (!%p2353_p4)
}
 0x33d   : > { %2125 = dma.vmem_to_hbm [thread:$0]  (%p3304_p7), %s3142_s9, 16, %s1607_s11, %s1589_s7  }
 0x33e PF: > { %s3305_s0 = sld [smem:[#allocation11_spill]]  ;;  %s3306_s6 = sld [smem:[#allocation24_spill]] }
 0x33f   : > { %p2139_p5 = scmp.ge.s32.totalorder %s2495_s27, 2 }
 0x344   : > { %s1633_s3 = sand.u32 1, %s3305_s0   ;;  %p3307_p13 = scmp.ne.s32.totalorder %s3306_s6, 0 }
 0x345   : > { %s1634_s18 = scalar_lea.sflag [#allocation4], %s1633_s3 }
 0x346   : > { %p2135_p10 = pnand %p2139_p5, %p3307_p13 }
 0x348   : > { %2430 = dma.done.wait (!%p2135_p10), %s1634_s18, 16  }
 0x349   : > { %2432 = vsyncadd (!%p2135_p10), %s1634_s18, 4294967280  ;;  %s23_s27 = sadd.s32 1, %s2495_s27   ;;  %s3309_s8 = sld [smem:[#allocation12_spill]] }
 0x34a   : > { %p3170_p12 = scmp.ge.s32.totalorder %s23_s27, 10   ;;  %s3310_s9 = sld [smem:[#allocation13_spill]] }
 0x34b   : > { %s3311_s11 = smov %s2732_s12  ;;  %s3312_s22 = sld [smem:[#allocation17_spill]] }
 0x34c   : > { %s3313_s7 = sld [smem:[#allocation19_spill]]  ;;  %s3314_s25 = sld [smem:[#allocation21_spill]] }
 0x34d   : > { %s3315_s30 = sld [smem:[#allocation23_spill]]  ;;  %s3317_s13 = smov %s2443_s14 }
 0x34e   : > { %s3318_s14 = smov %s2741_s15  ;;  %s3320_s16 = smov %s2455_s17 }
 0x34f   : > { %s3316_s12 = smov %s3309_s8  ;;  %s3321_s17 = smov %s2735_s4 }
 0x350   : > { %s3319_s15 = smov %s3310_s9  ;;  %s3322_s18 = smov %s2463_s19 }
 0x351   : > { %s3323_s19 = smov %s2467_s20  ;;  %s3324_s20 = smov %s3311_s11 }
 0x352   : > { %s3325_s21 = smov %s2483_s24  ;;  %s3326_s23 = smov %s2491_s26 }
 0x353   : > { %s3327_s24 = smov %s3313_s7  ;;  %s3328_s26 = smov %s3315_s30 }
 0x354   :  { %22 = sbr.rel (!%p3170_p12) target bundleno = 17 (0x11), region = 106 }
 0x35b   :  { %1638 = vsyncpa [#allocation3], 1 }
 0x35c   :  { %1640 = vsyncpa [#allocation3 + $0x1], 1 }
 0x35d   :  { %1641 = vsyncpa [#allocation6], 1 }
 0x35e   :  { %1643 = vsyncpa [#allocation6 + $0x1], 1 }
 0x35f   :  { %1644 = vsyncpa [#allocation4], 1 }
 0x360   :  { %1646 = vsyncpa [#allocation4 + $0x1], 1 }

</bundles_post_ra>
